<compile_context>
chip_gen: v5e
topology: v5e:2x2
jax: 0.10.0
libtpu: 0.0.40
codegen_flags: <defaults>
</compile_context>

<pallas_src>
import functools
import math

import jax
import jax.numpy as jnp
import numpy as np
from jax.experimental import pallas as pl
from jax.experimental.pallas import tpu as pltpu


def _round_up(v, m):
    return ((v + m - 1) // m) * m


def _cnn_kernel(x_ref, ew_ref, eb_ref, cw_hbm, cb_ref, fw_ref, fb_ref,
                out_ref, cw_buf, dma_sem, *, num_layers, num_classes):
    N = x_ref.shape[0]
    H = ew_ref.shape[1]          # padded hidden size
    C_pad = fw_ref.shape[1]      # padded (lane-dense) number of classes

    def conv_w_copy(layer, slot):
        return pltpu.make_async_copy(cw_hbm.at[layer], cw_buf.at[slot],
                                     dma_sem.at[slot])

    # Prefetch layer-0 conv weights; the DMA overlaps with the embedding matmul.
    if num_layers > 0:
        conv_w_copy(0, 0).start()

    # ---- embedding: (N, D) @ (D, H) + b   (bf16 MXU operands, f32 accumulate) ----
    x = jnp.dot(x_ref[...].astype(jnp.bfloat16), ew_ref[...],
                preferred_element_type=jnp.float32) + eb_ref[...]

    # ---- conv halo masks, hoisted out of the unrolled layer loop ----
    row = jax.lax.broadcasted_iota(jnp.int32, (N, H), 0)
    keep_prev = row != 0          # row 0 has no left neighbour (zero padding)
    keep_next = row != N - 1      # row N-1 has no right neighbour (zero padding)

    # ---- conv stack: Conv1d(H, H, k=3, pad=1) over the N axis, + ReLU ----
    # TODO(synk): for production H >= 128, fuse the three taps into a single
    # (N, 3H) @ (3H, H) matmul to keep the 256-deep MXU full on v6e/v7x.
    for l in range(num_layers):
        slot = l & 1
        conv_w_copy(l, slot).wait()
        if l + 1 < num_layers:                 # prefetch next layer's weights
            conv_w_copy(l + 1, 1 - slot).start()

        # roll is cyclic with non-negative shift; wrapped rows are masked to 0.
        x_prev = jnp.where(keep_prev, pltpu.roll(x, shift=1, axis=0), 0.0)
        x_next = jnp.where(keep_next, pltpu.roll(x, shift=N - 1, axis=0), 0.0)
        y = (jnp.dot(x_prev.astype(jnp.bfloat16), cw_buf[slot, 0],
                     preferred_element_type=jnp.float32)
             + jnp.dot(x.astype(jnp.bfloat16), cw_buf[slot, 1],
                       preferred_element_type=jnp.float32)
             + jnp.dot(x_next.astype(jnp.bfloat16), cw_buf[slot, 2],
                       preferred_element_type=jnp.float32)
             + cb_ref[l])
        x = jnp.maximum(y, 0.0)

    # TODO(synk): nn.Dropout treated as identity (inference / eval mode).

    # ---- fc into a lane-dense (N, C_pad) tile, masked softmax over real classes ----
    logits = jnp.dot(x.astype(jnp.bfloat16), fw_ref[...],
                     preferred_element_type=jnp.float32) + fb_ref[...]
    lane = jax.lax.broadcasted_iota(jnp.int32, (N, C_pad), 1)
    logits = jnp.where(lane < num_classes, logits, -1e30)   # mask padded lanes
    m = jnp.max(logits, axis=-1, keepdims=True)
    e = jnp.exp(logits - m)
    denom = jnp.sum(e, axis=-1, keepdims=True)
    out_ref[...] = e * pl.reciprocal(denom, approx=True)    # divide on the EUP


def prepare_params(params):
    """Pad hidden/class dims to 128-lane multiples and cast MXU weights to bf16.

    Zero padding is exact: padded hidden channels stay 0 through every layer and
    contribute nothing downstream; padded class lanes are masked in-kernel.
    """
    H = params["emb_w"].shape[1]
    C = params["fc_w"].shape[1]
    Hp = _round_up(H, 128)
    Cp = _round_up(C, 128)
    ph, pc = Hp - H, Cp - C
    return dict(
        emb_w=jnp.pad(params["emb_w"], ((0, 0), (0, ph))).astype(jnp.bfloat16),
        emb_b=jnp.pad(params["emb_b"], ((0, 0), (0, ph))),
        conv_w=jnp.pad(params["conv_w"],
                       ((0, 0), (0, 0), (0, ph), (0, ph))).astype(jnp.bfloat16),
        conv_b=jnp.pad(params["conv_b"], ((0, 0), (0, 0), (0, ph))),
        fc_w=jnp.pad(params["fc_w"], ((0, ph), (0, pc))).astype(jnp.bfloat16),
        fc_b=jnp.pad(params["fc_b"], ((0, 0), (0, pc))),
        num_classes=int(C),
    )


def _padded_bytes(shape, dtype):
    """Upper bound of the (8,128)-tiled VMEM footprint of one buffer."""
    itemsize = jnp.dtype(dtype).itemsize
    dims = list(shape)
    if len(dims) >= 1:
        dims[-1] = _round_up(dims[-1], 128)
    if len(dims) >= 2:
        dims[-2] = _round_up(dims[-2], 8 * (4 // itemsize))
    n = 1
    for d in dims:
        n *= d
    return n * itemsize


def cnn_classifier_forward(x, prepared):
    """x: (N, input_size) float32. Returns (N, num_classes) softmax probabilities."""
    N, D = x.shape
    C = prepared["num_classes"]
    L, _, Hp, _ = prepared["conv_w"].shape
    Cp = prepared["fc_w"].shape[1]

    kernel = functools.partial(_cnn_kernel, num_layers=L, num_classes=C)
    vmem = pl.BlockSpec(memory_space=pltpu.MemorySpace.VMEM)
    hbm = pl.BlockSpec(memory_space=pl.ANY)   # conv weights stay in HBM, DMA'd per layer

    # VMEM budget: everything except conv_w is resident, plus the 2-deep weight buffer.
    vmem_args = [
        (x.shape, x.dtype),
        (prepared["emb_w"].shape, prepared["emb_w"].dtype),
        (prepared["emb_b"].shape, prepared["emb_b"].dtype),
        (prepared["conv_b"].shape, prepared["conv_b"].dtype),
        (prepared["fc_w"].shape, prepared["fc_w"].dtype),
        (prepared["fc_b"].shape, prepared["fc_b"].dtype),
        ((N, Cp), jnp.float32),                 # lane-dense output
        ((2, 3, Hp, Hp), jnp.bfloat16),         # double-buffered conv weights
    ]
    resident = sum(_padded_bytes(s, d) for s, d in vmem_args)
    vmem_limit = int(min(64 * 2**20, 2 * resident + 4 * 2**20))

    flops = 2 * N * (D * Hp + L * 3 * Hp * Hp + Hp * Cp)
    bytes_accessed = int(
        x.size * x.dtype.itemsize
        + sum(v.size * v.dtype.itemsize
              for k, v in prepared.items() if k != "num_classes")
        + N * Cp * 4)
    cost = pl.CostEstimate(flops=flops, transcendentals=N * (Cp + 1),
                           bytes_accessed=bytes_accessed)

    out = pl.pallas_call(
        kernel,
        out_shape=jax.ShapeDtypeStruct((N, Cp), jnp.float32),
        in_specs=[vmem, vmem, vmem, hbm, vmem, vmem, vmem],
        out_specs=vmem,
        scratch_shapes=[pltpu.VMEM((2, 3, Hp, Hp), jnp.bfloat16),
                        pltpu.SemaphoreType.DMA((2,))],
        compiler_params=pltpu.CompilerParams(vmem_limit_bytes=vmem_limit),
        cost_estimate=cost,
    )(x, prepared["emb_w"], prepared["emb_b"], prepared["conv_w"],
      prepared["conv_b"], prepared["fc_w"], prepared["fc_b"])

    # TODO(synk): for large batches, add a batch grid (tiles with a num_layers-row
    # halo) and dimension_semantics=("parallel",) so v7x's second TensorCore is used.
    return out[:, :C]


def _xavier_uniform(key, shape, fan_in, fan_out):
    bound = math.sqrt(6.0 / (fan_in + fan_out))
    return jax.random.uniform(key, shape, jnp.float32, -bound, bound)


def init_params(key, input_size, hidden_size, num_classes, num_layers):
    keys = jax.random.split(key, 4 + 2 * num_layers)
    # embedding: torch weight (H, D) -> pass pre-transposed (D, H)
    emb_w = _xavier_uniform(keys[0], (input_size, hidden_size),
                            input_size, hidden_size)
    emb_b = jax.random.uniform(keys[1], (1, hidden_size), jnp.float32,
                               -1.0 / math.sqrt(input_size),
                               1.0 / math.sqrt(input_size))
    # convs: torch weight (H_out, H_in, 3) -> store per-tap transposed (3, H_in, H_out)
    conv_w, conv_b = [], []
    for i in range(num_layers):
        w = _xavier_uniform(keys[2 + 2 * i], (hidden_size, hidden_size, 3),
                            hidden_size * 3, hidden_size * 3)
        conv_w.append(jnp.transpose(w, (2, 1, 0)))
        b_bound = 1.0 / math.sqrt(hidden_size * 3)
        conv_b.append(jax.random.uniform(keys[3 + 2 * i], (1, hidden_size),
                                         jnp.float32, -b_bound, b_bound))
    conv_w = jnp.stack(conv_w, axis=0)          # (L, 3, H, H)
    conv_b = jnp.stack(conv_b, axis=0)          # (L, 1, H)
    # fc: torch weight (C, H) -> pass pre-transposed (H, C)
    fc_w = _xavier_uniform(keys[-2], (hidden_size, num_classes),
                           hidden_size, num_classes)
    fc_b = jax.random.uniform(keys[-1], (1, num_classes), jnp.float32,
                              -1.0 / math.sqrt(hidden_size),
                              1.0 / math.sqrt(hidden_size))
    return dict(emb_w=emb_w, emb_b=emb_b, conv_w=conv_w, conv_b=conv_b,
                fc_w=fc_w, fc_b=fc_b)


def reference_forward(x, params):
    """Pure-JAX f32 reference matching the PyTorch forward (eval mode)."""
    h = x @ params["emb_w"] + params["emb_b"]
    L = params["conv_w"].shape[0]
    for l in range(L):
        hp = jnp.pad(h, ((1, 1), (0, 0)))       # zero-pad along the conv length axis (N)
        y = (hp[:-2] @ params["conv_w"][l, 0]
             + hp[1:-1] @ params["conv_w"][l, 1]
             + hp[2:] @ params["conv_w"][l, 2]
             + params["conv_b"][l])
        h = jnp.maximum(y, 0.0)
    logits = h @ params["fc_w"] + params["fc_b"]
    return jax.nn.softmax(logits, axis=-1)


if __name__ == "__main__":
    # Small shapes implied by the module: batch=8, input_size=16, hidden_size=32,
    # num_classes=4, num_layers=2.
    N, D, H, C, L = 8, 16, 32, 4, 2

    key = jax.random.PRNGKey(0)
    k_x, k_p = jax.random.split(key)
    x = jax.random.normal(k_x, (N, D), jnp.float32)
    params = init_params(k_p, D, H, C, L)
    prepared = prepare_params(params)

    out = cnn_classifier_forward(x, prepared)
    out = jax.block_until_ready(out)
    assert out.shape == (N, C)

    # bf16 MXU operands + approx reciprocal -> compare against the f32 reference
    # with a correspondingly loose (but still structure-revealing) tolerance.
    ref = reference_forward(x, params)
    np.testing.assert_allclose(np.asarray(out), np.asarray(ref),
                               rtol=5e-2, atol=2e-2)
    print("KERNEL_OK")
</pallas_src>

<mosaic_0001>
module attributes {stable_mosaic.version = 11 : i64} {
  func.func @_cnn_kernel(%arg0: memref<8x16xf32, #tpu.memory_space<vmem>>, %arg1: memref<16x128xbf16, #tpu.memory_space<vmem>>, %arg2: memref<1x128xf32, #tpu.memory_space<vmem>>, %arg3: memref<2x3x128x128xbf16, #tpu.memory_space<any>>, %arg4: memref<2x1x128xf32, #tpu.memory_space<vmem>>, %arg5: memref<128x128xbf16, #tpu.memory_space<vmem>>, %arg6: memref<1x128xf32, #tpu.memory_space<vmem>>, %arg7: memref<8x128xf32, #tpu.memory_space<vmem>>, %arg8: memref<2x3x128x128xbf16, #tpu.memory_space<vmem>>, %arg9: memref<2x!tpu.dma_semaphore, #tpu.memory_space<semaphore_mem>>) attributes {dimension_semantics = [], scalar_prefetch = 0 : i64, scratch_operands = 2 : i64, tpu.core_type = #tpu.core_type<tc>} {
    %c0_i32 = arith.constant 0 : i32
    %c0_i32_0 = arith.constant 0 : i32
    %c0_i32_1 = arith.constant 0 : i32
    %c0_i32_2 = arith.constant 0 : i32
    %c0_i32_3 = arith.constant 0 : i32
    %c0_i32_4 = arith.constant 0 : i32
    %0 = tpu.memref_slice %arg3[%c0_i32, %c0_i32_2, %c0_i32_3, %c0_i32_4] : memref<2x3x128x128xbf16, #tpu.memory_space<any>> -> memref<1x3x128x128xbf16, #tpu.memory_space<any>>
    %1 = tpu.memref_squeeze %0 : memref<1x3x128x128xbf16, #tpu.memory_space<any>> -> memref<3x128x128xbf16, #tpu.memory_space<any>>
    %c0_i32_5 = arith.constant 0 : i32
    %c0_i32_6 = arith.constant 0 : i32
    %c0_i32_7 = arith.constant 0 : i32
    %2 = tpu.memref_slice %arg8[%c0_i32_0, %c0_i32_5, %c0_i32_6, %c0_i32_7] : memref<2x3x128x128xbf16, #tpu.memory_space<vmem>> -> memref<1x3x128x128xbf16, #tpu.memory_space<vmem>>
    %3 = tpu.memref_squeeze %2 : memref<1x3x128x128xbf16, #tpu.memory_space<vmem>> -> memref<3x128x128xbf16, #tpu.memory_space<vmem>>
    %4 = tpu.memref_slice %arg9[%c0_i32_1] : memref<2x!tpu.dma_semaphore, #tpu.memory_space<semaphore_mem>> -> memref<1x!tpu.dma_semaphore, #tpu.memory_space<semaphore_mem>>
    %5 = tpu.memref_squeeze %4 : memref<1x!tpu.dma_semaphore, #tpu.memory_space<semaphore_mem>> -> memref<!tpu.dma_semaphore, #tpu.memory_space<semaphore_mem>>
    tpu.enqueue_dma source(%1 : memref<3x128x128xbf16, #tpu.memory_space<any>>) target(%3 : memref<3x128x128xbf16, #tpu.memory_space<vmem>>) target_semaphore(%5 : memref<!tpu.dma_semaphore, #tpu.memory_space<semaphore_mem>>)
    %c0 = arith.constant 0 : index
    %c0_8 = arith.constant 0 : index
    %6 = vector.load %arg0[%c0, %c0_8] : memref<8x16xf32, #tpu.memory_space<vmem>>, vector<8x16xf32>
    %7 = arith.truncf %6 : vector<8x16xf32> to vector<8x16xbf16>
    %c0_9 = arith.constant 0 : index
    %c0_10 = arith.constant 0 : index
    %8 = vector.load %arg1[%c0_9, %c0_10] : memref<16x128xbf16, #tpu.memory_space<vmem>>, vector<16x128xbf16>
    %cst = arith.constant dense<0.000000e+00> : vector<8x128xf32>
    %9 = tpu.matmul %7, %8, %cst {dimension_numbers = #tpu.dot_dimension_numbers<[1], [0], [0], [1], [0, 0, 1, 1], [], []>} : vector<8x16xbf16>, vector<16x128xbf16>, vector<8x128xf32> -> vector<8x128xf32>
    %c0_11 = arith.constant 0 : index
    %c0_12 = arith.constant 0 : index
    %10 = vector.load %arg2[%c0_11, %c0_12] : memref<1x128xf32, #tpu.memory_space<vmem>>, vector<1x128xf32>
    %11 = vector.broadcast %10 : vector<1x128xf32> to vector<8x128xf32>
    %12 = arith.addf %9, %11 : vector<8x128xf32>
    %13 = tpu.iota {dimensions = array<i32: 0>} : vector<8x128xi32>
    %c0_i32_13 = arith.constant 0 : i32
    %14 = vector.broadcast %c0_i32_13 : i32 to vector<8x128xi32>
    %15 = arith.cmpi ne, %13, %14 : vector<8x128xi32>
    %c7_i32 = arith.constant 7 : i32
    %16 = vector.broadcast %c7_i32 : i32 to vector<8x128xi32>
    %17 = arith.cmpi ne, %13, %16 : vector<8x128xi32>
    %c0_i32_14 = arith.constant 0 : i32
    %c0_i32_15 = arith.constant 0 : i32
    %c0_i32_16 = arith.constant 0 : i32
    %c0_i32_17 = arith.constant 0 : i32
    %c0_i32_18 = arith.constant 0 : i32
    %c0_i32_19 = arith.constant 0 : i32
    %18 = tpu.memref_slice %arg3[%c0_i32_14, %c0_i32_17, %c0_i32_18, %c0_i32_19] : memref<2x3x128x128xbf16, #tpu.memory_space<any>> -> memref<1x3x128x128xbf16, #tpu.memory_space<any>>
    %19 = tpu.memref_squeeze %18 : memref<1x3x128x128xbf16, #tpu.memory_space<any>> -> memref<3x128x128xbf16, #tpu.memory_space<any>>
    %c0_i32_20 = arith.constant 0 : i32
    %c0_i32_21 = arith.constant 0 : i32
    %c0_i32_22 = arith.constant 0 : i32
    %20 = tpu.memref_slice %arg8[%c0_i32_15, %c0_i32_20, %c0_i32_21, %c0_i32_22] : memref<2x3x128x128xbf16, #tpu.memory_space<vmem>> -> memref<1x3x128x128xbf16, #tpu.memory_space<vmem>>
    %21 = tpu.memref_squeeze %20 : memref<1x3x128x128xbf16, #tpu.memory_space<vmem>> -> memref<3x128x128xbf16, #tpu.memory_space<vmem>>
    %22 = tpu.memref_slice %arg9[%c0_i32_16] : memref<2x!tpu.dma_semaphore, #tpu.memory_space<semaphore_mem>> -> memref<1x!tpu.dma_semaphore, #tpu.memory_space<semaphore_mem>>
    %23 = tpu.memref_squeeze %22 : memref<1x!tpu.dma_semaphore, #tpu.memory_space<semaphore_mem>> -> memref<!tpu.dma_semaphore, #tpu.memory_space<semaphore_mem>>
    tpu.wait_dma2 semaphore(%23 : memref<!tpu.dma_semaphore, #tpu.memory_space<semaphore_mem>>) src(%19 : memref<3x128x128xbf16, #tpu.memory_space<any>>) dst(%21 : memref<3x128x128xbf16, #tpu.memory_space<vmem>>)
    %c1_i32 = arith.constant 1 : i32
    %c1_i32_23 = arith.constant 1 : i32
    %c1_i32_24 = arith.constant 1 : i32
    %c0_i32_25 = arith.constant 0 : i32
    %c0_i32_26 = arith.constant 0 : i32
    %c0_i32_27 = arith.constant 0 : i32
    %24 = tpu.memref_slice %arg3[%c1_i32, %c0_i32_25, %c0_i32_26, %c0_i32_27] : memref<2x3x128x128xbf16, #tpu.memory_space<any>> -> memref<1x3x128x128xbf16, #tpu.memory_space<any>>
    %25 = tpu.memref_squeeze %24 : memref<1x3x128x128xbf16, #tpu.memory_space<any>> -> memref<3x128x128xbf16, #tpu.memory_space<any>>
    %c0_i32_28 = arith.constant 0 : i32
    %c0_i32_29 = arith.constant 0 : i32
    %c0_i32_30 = arith.constant 0 : i32
    %26 = tpu.memref_slice %arg8[%c1_i32_23, %c0_i32_28, %c0_i32_29, %c0_i32_30] : memref<2x3x128x128xbf16, #tpu.memory_space<vmem>> -> memref<1x3x128x128xbf16, #tpu.memory_space<vmem>>
    %27 = tpu.memref_squeeze %26 : memref<1x3x128x128xbf16, #tpu.memory_space<vmem>> -> memref<3x128x128xbf16, #tpu.memory_space<vmem>>
    %28 = tpu.memref_slice %arg9[%c1_i32_24] : memref<2x!tpu.dma_semaphore, #tpu.memory_space<semaphore_mem>> -> memref<1x!tpu.dma_semaphore, #tpu.memory_space<semaphore_mem>>
    %29 = tpu.memref_squeeze %28 : memref<1x!tpu.dma_semaphore, #tpu.memory_space<semaphore_mem>> -> memref<!tpu.dma_semaphore, #tpu.memory_space<semaphore_mem>>
    tpu.enqueue_dma source(%25 : memref<3x128x128xbf16, #tpu.memory_space<any>>) target(%27 : memref<3x128x128xbf16, #tpu.memory_space<vmem>>) target_semaphore(%29 : memref<!tpu.dma_semaphore, #tpu.memory_space<semaphore_mem>>)
    %c1_i32_31 = arith.constant 1 : i32
    %30 = tpu.dynamic_rotate %12 by %c1_i32_31 dim 0 : vector<8x128xf32>, i32 -> vector<8x128xf32>
    %cst_32 = arith.constant 0.000000e+00 : f32
    %31 = vector.broadcast %cst_32 : f32 to vector<8x128xf32>
    %32 = arith.select %15, %30, %31 : vector<8x128xi1>, vector<8x128xf32>
    %c7_i32_33 = arith.constant 7 : i32
    %33 = tpu.dynamic_rotate %12 by %c7_i32_33 dim 0 : vector<8x128xf32>, i32 -> vector<8x128xf32>
    %cst_34 = arith.constant 0.000000e+00 : f32
    %34 = vector.broadcast %cst_34 : f32 to vector<8x128xf32>
    %35 = arith.select %17, %33, %34 : vector<8x128xi1>, vector<8x128xf32>
    %36 = arith.truncf %32 : vector<8x128xf32> to vector<8x128xbf16>
    %c0_35 = arith.constant 0 : index
    %c0_36 = arith.constant 0 : index
    %c0_37 = arith.constant 0 : index
    %c0_38 = arith.constant 0 : index
    %37 = vector.load %arg8[%c0_35, %c0_36, %c0_37, %c0_38] : memref<2x3x128x128xbf16, #tpu.memory_space<vmem>>, vector<1x1x128x128xbf16>
    %38 = vector.shape_cast %37 : vector<1x1x128x128xbf16> to vector<128x128xbf16>
    %cst_39 = arith.constant dense<0.000000e+00> : vector<8x128xf32>
    %39 = tpu.matmul %36, %38, %cst_39 {dimension_numbers = #tpu.dot_dimension_numbers<[1], [0], [0], [1], [0, 0, 1, 1], [], []>} : vector<8x128xbf16>, vector<128x128xbf16>, vector<8x128xf32> -> vector<8x128xf32>
    %40 = arith.truncf %12 : vector<8x128xf32> to vector<8x128xbf16>
    %c0_40 = arith.constant 0 : index
    %c1 = arith.constant 1 : index
    %c0_41 = arith.constant 0 : index
    %c0_42 = arith.constant 0 : index
    %41 = vector.load %arg8[%c0_40, %c1, %c0_41, %c0_42] : memref<2x3x128x128xbf16, #tpu.memory_space<vmem>>, vector<1x1x128x128xbf16>
    %42 = vector.shape_cast %41 : vector<1x1x128x128xbf16> to vector<128x128xbf16>
    %cst_43 = arith.constant dense<0.000000e+00> : vector<8x128xf32>
    %43 = tpu.matmul %40, %42, %cst_43 {dimension_numbers = #tpu.dot_dimension_numbers<[1], [0], [0], [1], [0, 0, 1, 1], [], []>} : vector<8x128xbf16>, vector<128x128xbf16>, vector<8x128xf32> -> vector<8x128xf32>
    %44 = arith.addf %39, %43 : vector<8x128xf32>
    %45 = arith.truncf %35 : vector<8x128xf32> to vector<8x128xbf16>
    %c0_44 = arith.constant 0 : index
    %c2 = arith.constant 2 : index
    %c0_45 = arith.constant 0 : index
    %c0_46 = arith.constant 0 : index
    %46 = vector.load %arg8[%c0_44, %c2, %c0_45, %c0_46] : memref<2x3x128x128xbf16, #tpu.memory_space<vmem>>, vector<1x1x128x128xbf16>
    %47 = vector.shape_cast %46 : vector<1x1x128x128xbf16> to vector<128x128xbf16>
    %cst_47 = arith.constant dense<0.000000e+00> : vector<8x128xf32>
    %48 = tpu.matmul %45, %47, %cst_47 {dimension_numbers = #tpu.dot_dimension_numbers<[1], [0], [0], [1], [0, 0, 1, 1], [], []>} : vector<8x128xbf16>, vector<128x128xbf16>, vector<8x128xf32> -> vector<8x128xf32>
    %49 = arith.addf %44, %48 : vector<8x128xf32>
    %c0_48 = arith.constant 0 : index
    %c0_49 = arith.constant 0 : index
    %c0_50 = arith.constant 0 : index
    %50 = vector.load %arg4[%c0_48, %c0_49, %c0_50] : memref<2x1x128xf32, #tpu.memory_space<vmem>>, vector<1x1x128xf32>
    %51 = vector.shape_cast %50 : vector<1x1x128xf32> to vector<1x128xf32>
    %52 = vector.broadcast %51 : vector<1x128xf32> to vector<8x128xf32>
    %53 = arith.addf %49, %52 : vector<8x128xf32>
    %cst_51 = arith.constant 0.000000e+00 : f32
    %54 = vector.broadcast %cst_51 : f32 to vector<8x128xf32>
    %55 = arith.maximumf %53, %54 : vector<8x128xf32>
    %c1_i32_52 = arith.constant 1 : i32
    %c1_i32_53 = arith.constant 1 : i32
    %c1_i32_54 = arith.constant 1 : i32
    %c0_i32_55 = arith.constant 0 : i32
    %c0_i32_56 = arith.constant 0 : i32
    %c0_i32_57 = arith.constant 0 : i32
    %56 = tpu.memref_slice %arg3[%c1_i32_52, %c0_i32_55, %c0_i32_56, %c0_i32_57] : memref<2x3x128x128xbf16, #tpu.memory_space<any>> -> memref<1x3x128x128xbf16, #tpu.memory_space<any>>
    %57 = tpu.memref_squeeze %56 : memref<1x3x128x128xbf16, #tpu.memory_space<any>> -> memref<3x128x128xbf16, #tpu.memory_space<any>>
    %c0_i32_58 = arith.constant 0 : i32
    %c0_i32_59 = arith.constant 0 : i32
    %c0_i32_60 = arith.constant 0 : i32
    %58 = tpu.memref_slice %arg8[%c1_i32_53, %c0_i32_58, %c0_i32_59, %c0_i32_60] : memref<2x3x128x128xbf16, #tpu.memory_space<vmem>> -> memref<1x3x128x128xbf16, #tpu.memory_space<vmem>>
    %59 = tpu.memref_squeeze %58 : memref<1x3x128x128xbf16, #tpu.memory_space<vmem>> -> memref<3x128x128xbf16, #tpu.memory_space<vmem>>
    %60 = tpu.memref_slice %arg9[%c1_i32_54] : memref<2x!tpu.dma_semaphore, #tpu.memory_space<semaphore_mem>> -> memref<1x!tpu.dma_semaphore, #tpu.memory_space<semaphore_mem>>
    %61 = tpu.memref_squeeze %60 : memref<1x!tpu.dma_semaphore, #tpu.memory_space<semaphore_mem>> -> memref<!tpu.dma_semaphore, #tpu.memory_space<semaphore_mem>>
    tpu.wait_dma2 semaphore(%61 : memref<!tpu.dma_semaphore, #tpu.memory_space<semaphore_mem>>) src(%57 : memref<3x128x128xbf16, #tpu.memory_space<any>>) dst(%59 : memref<3x128x128xbf16, #tpu.memory_space<vmem>>)
    %c1_i32_61 = arith.constant 1 : i32
    %62 = tpu.dynamic_rotate %55 by %c1_i32_61 dim 0 : vector<8x128xf32>, i32 -> vector<8x128xf32>
    %cst_62 = arith.constant 0.000000e+00 : f32
    %63 = vector.broadcast %cst_62 : f32 to vector<8x128xf32>
    %64 = arith.select %15, %62, %63 : vector<8x128xi1>, vector<8x128xf32>
    %c7_i32_63 = arith.constant 7 : i32
    %65 = tpu.dynamic_rotate %55 by %c7_i32_63 dim 0 : vector<8x128xf32>, i32 -> vector<8x128xf32>
    %cst_64 = arith.constant 0.000000e+00 : f32
    %66 = vector.broadcast %cst_64 : f32 to vector<8x128xf32>
    %67 = arith.select %17, %65, %66 : vector<8x128xi1>, vector<8x128xf32>
    %68 = arith.truncf %64 : vector<8x128xf32> to vector<8x128xbf16>
    %c1_65 = arith.constant 1 : index
    %c0_66 = arith.constant 0 : index
    %c0_67 = arith.constant 0 : index
    %c0_68 = arith.constant 0 : index
    %69 = vector.load %arg8[%c1_65, %c0_66, %c0_67, %c0_68] : memref<2x3x128x128xbf16, #tpu.memory_space<vmem>>, vector<1x1x128x128xbf16>
    %70 = vector.shape_cast %69 : vector<1x1x128x128xbf16> to vector<128x128xbf16>
    %cst_69 = arith.constant dense<0.000000e+00> : vector<8x128xf32>
    %71 = tpu.matmul %68, %70, %cst_69 {dimension_numbers = #tpu.dot_dimension_numbers<[1], [0], [0], [1], [0, 0, 1, 1], [], []>} : vector<8x128xbf16>, vector<128x128xbf16>, vector<8x128xf32> -> vector<8x128xf32>
    %72 = arith.truncf %55 : vector<8x128xf32> to vector<8x128xbf16>
    %c1_70 = arith.constant 1 : index
    %c1_71 = arith.constant 1 : index
    %c0_72 = arith.constant 0 : index
    %c0_73 = arith.constant 0 : index
    %73 = vector.load %arg8[%c1_70, %c1_71, %c0_72, %c0_73] : memref<2x3x128x128xbf16, #tpu.memory_space<vmem>>, vector<1x1x128x128xbf16>
    %74 = vector.shape_cast %73 : vector<1x1x128x128xbf16> to vector<128x128xbf16>
    %cst_74 = arith.constant dense<0.000000e+00> : vector<8x128xf32>
    %75 = tpu.matmul %72, %74, %cst_74 {dimension_numbers = #tpu.dot_dimension_numbers<[1], [0], [0], [1], [0, 0, 1, 1], [], []>} : vector<8x128xbf16>, vector<128x128xbf16>, vector<8x128xf32> -> vector<8x128xf32>
    %76 = arith.addf %71, %75 : vector<8x128xf32>
    %77 = arith.truncf %67 : vector<8x128xf32> to vector<8x128xbf16>
    %c1_75 = arith.constant 1 : index
    %c2_76 = arith.constant 2 : index
    %c0_77 = arith.constant 0 : index
    %c0_78 = arith.constant 0 : index
    %78 = vector.load %arg8[%c1_75, %c2_76, %c0_77, %c0_78] : memref<2x3x128x128xbf16, #tpu.memory_space<vmem>>, vector<1x1x128x128xbf16>
    %79 = vector.shape_cast %78 : vector<1x1x128x128xbf16> to vector<128x128xbf16>
    %cst_79 = arith.constant dense<0.000000e+00> : vector<8x128xf32>
    %80 = tpu.matmul %77, %79, %cst_79 {dimension_numbers = #tpu.dot_dimension_numbers<[1], [0], [0], [1], [0, 0, 1, 1], [], []>} : vector<8x128xbf16>, vector<128x128xbf16>, vector<8x128xf32> -> vector<8x128xf32>
    %81 = arith.addf %76, %80 : vector<8x128xf32>
    %c1_80 = arith.constant 1 : index
    %c0_81 = arith.constant 0 : index
    %c0_82 = arith.constant 0 : index
    %82 = vector.load %arg4[%c1_80, %c0_81, %c0_82] : memref<2x1x128xf32, #tpu.memory_space<vmem>>, vector<1x1x128xf32>
    %83 = vector.shape_cast %82 : vector<1x1x128xf32> to vector<1x128xf32>
    %84 = vector.broadcast %83 : vector<1x128xf32> to vector<8x128xf32>
    %85 = arith.addf %81, %84 : vector<8x128xf32>
    %cst_83 = arith.constant 0.000000e+00 : f32
    %86 = vector.broadcast %cst_83 : f32 to vector<8x128xf32>
    %87 = arith.maximumf %85, %86 : vector<8x128xf32>
    %88 = arith.truncf %87 : vector<8x128xf32> to vector<8x128xbf16>
    %c0_84 = arith.constant 0 : index
    %c0_85 = arith.constant 0 : index
    %89 = vector.load %arg5[%c0_84, %c0_85] : memref<128x128xbf16, #tpu.memory_space<vmem>>, vector<128x128xbf16>
    %cst_86 = arith.constant dense<0.000000e+00> : vector<8x128xf32>
    %90 = tpu.matmul %88, %89, %cst_86 {dimension_numbers = #tpu.dot_dimension_numbers<[1], [0], [0], [1], [0, 0, 1, 1], [], []>} : vector<8x128xbf16>, vector<128x128xbf16>, vector<8x128xf32> -> vector<8x128xf32>
    %c0_87 = arith.constant 0 : index
    %c0_88 = arith.constant 0 : index
    %91 = vector.load %arg6[%c0_87, %c0_88] : memref<1x128xf32, #tpu.memory_space<vmem>>, vector<1x128xf32>
    %92 = vector.broadcast %91 : vector<1x128xf32> to vector<8x128xf32>
    %93 = arith.addf %90, %92 : vector<8x128xf32>
    %94 = tpu.iota {dimensions = array<i32: 1>} : vector<8x128xi32>
    %c4_i32 = arith.constant 4 : i32
    %95 = vector.broadcast %c4_i32 : i32 to vector<8x128xi32>
    %96 = arith.cmpi slt, %94, %95 : vector<8x128xi32>
    %cst_89 = arith.constant -1.000000e+30 : f32
    %97 = vector.broadcast %cst_89 : f32 to vector<8x128xf32>
    %98 = arith.select %96, %93, %97 : vector<8x128xi1>, vector<8x128xf32>
    %cst_90 = arith.constant dense<0xFF800000> : vector<8xf32>
    %99 = vector.multi_reduction <maximumf>, %98, %cst_90 [1] : vector<8x128xf32> to vector<8xf32>
    %100 = vector.shape_cast %99 : vector<8xf32> to vector<8x1xf32>
    %101 = vector.broadcast %100 : vector<8x1xf32> to vector<8x128xf32>
    %102 = arith.subf %98, %101 : vector<8x128xf32>
    %103 = math.exp %102 : vector<8x128xf32>
    %cst_91 = arith.constant dense<0.000000e+00> : vector<8xf32>
    %104 = vector.multi_reduction <add>, %103, %cst_91 [1] : vector<8x128xf32> to vector<8xf32>
    %105 = vector.shape_cast %104 : vector<8xf32> to vector<8x1xf32>
    %106 = tpu.reciprocal %105 {approx = true} : vector<8x1xf32> -> vector<8x1xf32>
    %107 = vector.broadcast %106 : vector<8x1xf32> to vector<8x128xf32>
    %108 = arith.mulf %103, %107 : vector<8x128xf32>
    %c0_92 = arith.constant 0 : index
    %c0_93 = arith.constant 0 : index
    %109 = vector.load %arg7[%c0_92, %c0_93] : memref<8x128xf32, #tpu.memory_space<vmem>>, vector<8x128xf32>
    tpu.vector_store %arg7[%c0_92, %c0_93], %108 {strides = array<i32>} : memref<8x128xf32, #tpu.memory_space<vmem>>, vector<8x128xf32>,
    return
  }
}

</mosaic_0001>

<bundles_post_ra>
// kernel: tpu_custom_call.1
= control target key start
LH: loop header
LB: loop body
LE: loop exit
PB: predicated region body
PF: predicated region fallthrough
CT: control target
= control target key end

     0   :  { %12 = vsyncpa [#allocation5], 0  ;;  %s1353_s0 = inlined_call_operand.hbm [shape: f32[8,16], index: 0, kind: input, shape index: {}]   ;;  %s1354_s1 = inlined_call_operand.hbm [shape: bf16[16,128], index: 1, kind: input, shape index: {}]   ;;  %s1355_s2 = inlined_call_operand.vmem [shape: f32[1,128], index: 2, kind: input, shape index: {}]   ;;  %s1356_s3 = inlined_call_operand.hbm [shape: bf16[2,3,128,128], index: 3, kind: input, shape index: {}]   ;;  %s1357_s4 = inlined_call_operand.vmem [shape: f32[2,1,128], index: 4, kind: input, shape index: {}]   ;;  %s1358_s5 = inlined_call_operand.hbm [shape: bf16[128,128], index: 5, kind: input, shape index: {}]   ;;  %s1359_s6 = inlined_call_operand.vmem [shape: f32[1,128], index: 6, kind: input, shape index: {}]   ;;  %s1360_s7 = inlined_call_operand.hbm [shape: f32[8,128], index: 7, kind: output, shape index: {}]  }
   0x1   :  { %13 = vsyncpa [#allocation8], 0  ;;  %s30_s26 = sshll.u32 %s1354_s1, 4  ;;  %s31_s26 = int_to_ptr.hbm [resolvable:$true] %s30_s26 }
   0x2   :  { %14 = vsyncpa [#allocation6], 0  ;;  %s1235_s27 = smov [#allocation7]   ;;  %s20_s8 = sshll.u32 %s1353_s0, 4  ;;  %s21_s8 = int_to_ptr.hbm [resolvable:$true] %s20_s8 }
   0x3   :  { %s32_s28 = sshll.u32 %s1235_s27, 4  ;;  %s1236_s9 = smov 64   ;;  %s33_s28 = int_to_ptr.vmem [resolvable:$true] %s32_s28 }
   0x4   :  { %s1237_s10 = smov 4   ;;  %s1238_s11 = smov [#allocation4]  }
   0x5   :  { %38 = dma.hbm_to_vmem [thread:$0]  %s31_s26, 128, %s33_s28, [#allocation8], %s1236_s9, %s1236_s9, %s1237_s10  }
   0x6   :  { %s22_s12 = sshll.u32 %s1238_s11, 4  ;;  %s47_s15 = sshll.u32 %s1358_s5, 4  ;;  %s23_s12 = int_to_ptr.vmem [resolvable:$true] %s22_s12  ;;  %s48_s15 = int_to_ptr.hbm [resolvable:$true] %s47_s15 }
   0x7   :  { %25 = dma.hbm_to_vmem [thread:$0]  %s21_s8, 128, %s23_s12, [#allocation5]  }
   0x8   :  { %s1239_s1 = smov [#allocation9]  }
   0x9   :  { %s49_s16 = sshll.u32 %s1239_s1, 4  ;;  %s50_s16 = int_to_ptr.vmem [resolvable:$true] %s49_s16 }
   0xa   :  { %55 = dma.hbm_to_vmem [thread:$0]  %s48_s15, 1024, %s50_s16, [#allocation8], %s1236_s9, %s1236_s9, %s1237_s10  }
   0xb   :  { %1225 = dma.done.wait [#allocation5], 128  }
   0xc   :  { %1226 = vsyncadd [#allocation5], 4294967168 }
   0xd   :  { %1227 = dma.done.wait [#allocation8], 1152  }
   0xe   :  { %1228 = vsyncadd [#allocation8], 4294966144  ;;  %v1008_v0 = vld [vmem:[#allocation7] sm:$0xff]  ;;  %v84_v1 = vld [vmem:[#allocation4] sm:$0xff]  ;;  %vm98_vm0 = vcmask 130048   ;;  %s78_s5 = sshll.u32 %s1356_s3, 4  ;;  %v115_v3 = vlaneseq  ;;  %s79_s5 = int_to_ptr.hbm [resolvable:$true] %s78_s5 }
   0xf   :  { %v85_v2 = vpack.c.bf16 %v84_v1, %v84_v1  ;;  %109 = vmatpush.bf16.msra.mxu0 %v1008_v0  ;;  %s1240_s18 = smov [#allocation2]   ;;  %v1073_v5 = vld [vmem:[%s1355_s2] ss:$0 sm:$0xff] }
  0x10   :  { %s80_s19 = sshll.u32 %s1240_s18, 4  ;;  %v1296_v4 = vshrl.u32 %v115_v3, 7  ;;  %s81_s19 = int_to_ptr.vmem [resolvable:$true] %s80_s19 }
  0x11   :  { %83 = dma.hbm_to_vmem [thread:$0]  %s79_s5, 3072, %s81_s19, [#allocation3] }
  0x12   :  { %768 = vmatmul.msk.bf16.vlgmr.msra.gmra.mxu0 %vm98_vm0, %v85_v2  ;;  %vm117_vm1 = vcmp.ne.s32.totalorder %v1296_v4, 0  ;;  %vm118_vm2 = vcmp.ne.s32.totalorder %v1296_v4, 7 }
  0x8f   :  { %v111_v6 = vpop.f32.mrf.mxu0 }
  0x90   :  { %v1303_v7 = vadd.f32 %v1073_v5, %v111_v6 }
  0x97   :  { %v113_v8 = vpop.f32.mrf.mxu0 }
  0x98   :  { %1229 = dma.done.wait [#allocation3], 3072 }
  0x99   :  { %1230 = vsyncadd [#allocation3], 4294964224  ;;  %s124_s24 = scalar_lea.hbm %s1356_s3, 192  ;;  %s1241_s26 = smov [#allocation2 + $0xc0]   ;;  %v140_v30 = vrot.slane %v1303_v7, 7  ;;  %v142_v33 = vrot.slane %v1303_v7, 1  ;;  %v161_v35 = vpack.c.bf16 %v1303_v7, %v1303_v7 }
  0x9a   :  { %s134_s25 = sshll.u32 %s124_s24, 4  ;;  %s136_s27 = sshll.u32 %s1241_s26, 4  ;;  %vm1315_vm3 = vmpackc.low %vm117_vm1, %vm117_vm1  ;;  %v1074_v44 = vld [vmem:[%s1357_s4] ss:$0 sm:$0xff]  ;;  %s135_s25 = int_to_ptr.hbm [resolvable:$true] %s134_s25  ;;  %s137_s27 = int_to_ptr.vmem [resolvable:$true] %s136_s27 }
  0x9b   :  { %139 = dma.hbm_to_vmem [thread:$0]  %s135_s25, 3072, %s137_s27, [#allocation3 + $0x1]  ;;  %v834_v36 = vpack.c.bf16 %v140_v30, %v140_v30  ;;  %v869_v38 = vpack.c.bf16 %v142_v33, %v142_v33  ;;  %vm1322_vm4 = vmpackc.low %vm118_vm2, %vm118_vm2 }
  0x9c   :  { %v1024_v9 = vld [vmem:[#allocation2 + $0x78] sm:$0xff]  ;;  %v1023_v12 = vld [vmem:[#allocation2 + $0x70] sm:$0xff]  ;;  %v1022_v15 = vld [vmem:[#allocation2 + $0x68] sm:$0xff] }
  0x9d   :  { %v1016_v10 = vld [vmem:[#allocation2 + $0x38] sm:$0xff]  ;;  %227 = vmatpush.bf16.msra.mxu1 %v1024_v9  ;;  %v1015_v13 = vld [vmem:[#allocation2 + $0x30] sm:$0xff]  ;;  %v1014_v16 = vld [vmem:[#allocation2 + $0x28] sm:$0xff] }
  0x9e   :  { %v1032_v11 = vld [vmem:[#allocation2 + $0xb8] sm:$0xff]  ;;  %288 = vmatpush.bf16.msra.mxu2 %v1016_v10  ;;  %v1031_v14 = vld [vmem:[#allocation2 + $0xb0] sm:$0xff]  ;;  %v1030_v17 = vld [vmem:[#allocation2 + $0xa8] sm:$0xff] }
  0x9f   :  { %367 = vmatpush.bf16.msra.mxu3 %v1032_v11  ;;  %v1021_v18 = vld [vmem:[#allocation2 + $0x60] sm:$0xff]  ;;  %v1020_v21 = vld [vmem:[#allocation2 + $0x58] sm:$0xff]  ;;  %v1019_v24 = vld [vmem:[#allocation2 + $0x50] sm:$0xff] }
  0xa0   :  { %v1013_v19 = vld [vmem:[#allocation2 + $0x20] sm:$0xff]  ;;  %v1012_v22 = vld [vmem:[#allocation2 + $0x18] sm:$0xff]  ;;  %v1011_v25 = vld [vmem:[#allocation2 + $0x10] sm:$0xff] }
  0xa1   :  { %228 = vmatpush.bf16.msra.mxu1 %v1023_v12  ;;  %v1029_v20 = vld [vmem:[#allocation2 + $0xa0] sm:$0xff]  ;;  %v1028_v23 = vld [vmem:[#allocation2 + $0x98] sm:$0xff]  ;;  %v1027_v26 = vld [vmem:[#allocation2 + $0x90] sm:$0xff] }
  0xa2   :  { %289 = vmatpush.bf16.msra.mxu2 %v1015_v13  ;;  %v1018_v27 = vld [vmem:[#allocation2 + $0x48] sm:$0xff]  ;;  %v1017_v31 = vld [vmem:[#allocation2 + $0x40] sm:$0xff] }
  0xa3   :  { %368 = vmatpush.bf16.msra.mxu3 %v1031_v14  ;;  %v1010_v28 = vld [vmem:[#allocation2 + $0x8] sm:$0xff]  ;;  %v1009_v32 = vld [vmem:[#allocation2] sm:$0xff] }
  0xa4   :  { %v1026_v29 = vld [vmem:[#allocation2 + $0x88] sm:$0xff]  ;;  %v1025_v34 = vld [vmem:[#allocation2 + $0x80] sm:$0xff] }
  0xa5   :  { %229 = vmatpush.bf16.msra.mxu1 %v1022_v15 }
  0xa6   :  { %290 = vmatpush.bf16.msra.mxu2 %v1014_v16 }
  0xa7   :  { %369 = vmatpush.bf16.msra.mxu3 %v1030_v17 }
  0xa9   :  { %230 = vmatpush.bf16.msra.mxu1 %v1021_v18 }
  0xaa   :  { %291 = vmatpush.bf16.msra.mxu2 %v1013_v19 }
  0xab   :  { %370 = vmatpush.bf16.msra.mxu3 %v1029_v20 }
  0xad   :  { %231 = vmatpush.bf16.msra.mxu1 %v1020_v21 }
  0xae   :  { %292 = vmatpush.bf16.msra.mxu2 %v1012_v22 }
  0xaf   :  { %371 = vmatpush.bf16.msra.mxu3 %v1028_v23 }
  0xb1   :  { %232 = vmatpush.bf16.msra.mxu1 %v1019_v24 }
  0xb2   :  { %293 = vmatpush.bf16.msra.mxu2 %v1011_v25 }
  0xb3   :  { %372 = vmatpush.bf16.msra.mxu3 %v1027_v26 }
  0xb5   :  { %233 = vmatpush.bf16.msra.mxu1 %v1018_v27 }
  0xb6   :  { %294 = vmatpush.bf16.msra.mxu2 %v1010_v28 }
  0xb7   :  { %373 = vmatpush.bf16.msra.mxu3 %v1026_v29 }
  0xb9   :  { %234 = vmatpush.bf16.msra.mxu1 %v1017_v31 }
  0xba   :  { %295 = vmatpush.bf16.msra.mxu2 %v1009_v32 }
  0xbb   :  { %374 = vmatpush.bf16.msra.mxu3 %v1025_v34 }
  0xbc   :  { %235 = vmatmul.bf16.vlgmr.msra.gmra.mxu1 %v161_v35 }
  0xbd   :  { %835 = vmatmul.msk.bf16.vlgmr.msra.gmra.mxu2 %vm1315_vm3, %v834_v36 }
  0xbe   :  { %870 = vmatmul.msk.bf16.vlgmr.msra.gmra.mxu3 %vm1322_vm4, %v869_v38 }
 0x139   :  { %v236_v40 = vpop.f32.mrf.mxu1 }
 0x140   :  { %v297_v41 = vpop.f32.mrf.mxu2 }
 0x141   :  { %v298_v42 = vadd.f32 %v297_v41, %v236_v40  ;;  %v376_v43 = vpop.f32.mrf.mxu3  ;;  %v238_v45 = vpop.f32.mrf.mxu1 }
 0x143   :  { %v380_v46 = vadd.f32 %v376_v43, %v298_v42 }
 0x145   :  { %v385_v47 = vadd.f32 %v1074_v44, %v380_v46 }
 0x147   :  { %v1333_v48 = vmax.f32 %v385_v47, 0.0 }
 0x148   :  { %v299_v49 = vpop.f32.mrf.mxu2 }
 0x149   :  { %v378_v50 = vpop.f32.mrf.mxu3 }
 0x14a   :  { %1231 = dma.done.wait [#allocation3 + $0x1], 3072 }
 0x14b   :  { %1232 = vsyncadd [#allocation3 + $0x1], 4294964224  ;;  %v1048_v51 = vld [vmem:[#allocation2 + $0x138] sm:$0xff]  ;;  %v1047_v54 = vld [vmem:[#allocation2 + $0x130] sm:$0xff]  ;;  %v389_v13 = vrot.slane %v1333_v48, 7  ;;  %v391_v16 = vrot.slane %v1333_v48, 1  ;;  %v410_v18 = vpack.c.bf16 %v1333_v48, %v1333_v48 }
 0x14c   :  { %v1040_v52 = vld [vmem:[#allocation2 + $0xf8] sm:$0xff]  ;;  %476 = vmatpush.bf16.msrb.mxu0 %v1048_v51  ;;  %v1039_v55 = vld [vmem:[#allocation2 + $0xf0] sm:$0xff]  ;;  %v1046_v57 = vld [vmem:[#allocation2 + $0x128] sm:$0xff]  ;;  %v720_v37 = vand.u32 127, %v115_v3 }
 0x14d   :  { %v1056_v53 = vld [vmem:[#allocation2 + $0x178] sm:$0xff]  ;;  %537 = vmatpush.bf16.msrb.mxu1 %v1040_v52  ;;  %v1055_v56 = vld [vmem:[#allocation2 + $0x170] sm:$0xff]  ;;  %v1038_v58 = vld [vmem:[#allocation2 + $0xe8] sm:$0xff]  ;;  %v936_v19 = vpack.c.bf16 %v389_v13, %v389_v13  ;;  %v971_v20 = vpack.c.bf16 %v391_v16, %v391_v16 }
 0x14e   :  { %616 = vmatpush.bf16.msrb.mxu2 %v1056_v53  ;;  %v1054_v59 = vld [vmem:[#allocation2 + $0x168] sm:$0xff]  ;;  %v1045_v61 = vld [vmem:[#allocation2 + $0x120] sm:$0xff]  ;;  %v1044_v1 = vld [vmem:[#allocation2 + $0x118] sm:$0xff]  ;;  %vm721_vm5 = vcmp.lt.s32.totalorder %v720_v37, 4 }
 0x14f   :  { %v1064_v60 = vld [vmem:[#allocation9 + $0x38] sm:$0xff]  ;;  %v1037_v62 = vld [vmem:[#allocation2 + $0xe0] sm:$0xff]  ;;  %v1036_v2 = vld [vmem:[#allocation2 + $0xd8] sm:$0xff] }
 0x150   :  { %477 = vmatpush.bf16.msrb.mxu0 %v1047_v54  ;;  %v1053_v63 = vld [vmem:[#allocation2 + $0x160] sm:$0xff]  ;;  %706 = vmatpush.bf16.msrb.mxu3 %v1064_v60  ;;  %v1052_v4 = vld [vmem:[#allocation2 + $0x158] sm:$0xff]  ;;  %v1043_v6 = vld [vmem:[#allocation2 + $0x110] sm:$0xff] }
 0x151   :  { %538 = vmatpush.bf16.msrb.mxu1 %v1039_v55  ;;  %v1063_v0 = vld [vmem:[#allocation9 + $0x30] sm:$0xff]  ;;  %v1062_v5 = vld [vmem:[#allocation9 + $0x28] sm:$0xff]  ;;  %v1035_v7 = vld [vmem:[#allocation2 + $0xd0] sm:$0xff] }
 0x152   :  { %617 = vmatpush.bf16.msrb.mxu2 %v1055_v56  ;;  %v1051_v8 = vld [vmem:[#allocation2 + $0x150] sm:$0xff]  ;;  %v1042_v10 = vld [vmem:[#allocation2 + $0x108] sm:$0xff]  ;;  %v1041_v14 = vld [vmem:[#allocation2 + $0x100] sm:$0xff] }
 0x153   :  { %v1061_v9 = vld [vmem:[#allocation9 + $0x20] sm:$0xff]  ;;  %v1034_v11 = vld [vmem:[#allocation2 + $0xc8] sm:$0xff]  ;;  %v1033_v15 = vld [vmem:[#allocation2 + $0xc0] sm:$0xff] }
 0x154   :  { %478 = vmatpush.bf16.msrb.mxu0 %v1046_v57  ;;  %707 = vmatpush.bf16.msrb.mxu3 %v1063_v0  ;;  %v1050_v12 = vld [vmem:[#allocation2 + $0x148] sm:$0xff]  ;;  %v1049_v17 = vld [vmem:[#allocation2 + $0x140] sm:$0xff]  ;;  %v1058_v23 = vld [vmem:[#allocation9 + $0x8] sm:$0xff] }
 0x155   :  { %539 = vmatpush.bf16.msrb.mxu1 %v1038_v58  ;;  %v1060_v21 = vld [vmem:[#allocation9 + $0x18] sm:$0xff]  ;;  %v1059_v22 = vld [vmem:[#allocation9 + $0x10] sm:$0xff]  ;;  %v1057_v24 = vld [vmem:[#allocation9] sm:$0xff] }
 0x156   :  { %618 = vmatpush.bf16.msrb.mxu2 %v1054_v59  ;;  %v1075_v28 = vld [vmem:[%s1357_s4 + $0x1] ss:$0 sm:$0xff]  ;;  %v1076_v38 = vld [vmem:[%s1359_s6] ss:$0 sm:$0xff]  ;;  %s1242_s4 = smov [#allocation10]   ;;  %s740_s6 = sshll.u32 %s1360_s7, 4  ;;  %s741_s6 = int_to_ptr.hbm [resolvable:$true] %s740_s6 }
 0x157   :  { %s738_s9 = sshll.u32 %s1242_s4, 4  ;;  %s739_s9 = int_to_ptr.vmem [resolvable:$true] %s738_s9 }
 0x158   :  { %479 = vmatpush.bf16.msrb.mxu0 %v1045_v61  ;;  %708 = vmatpush.bf16.msrb.mxu3 %v1062_v5 }
 0x159   :  { %540 = vmatpush.bf16.msrb.mxu1 %v1037_v62 }
 0x15a   :  { %619 = vmatpush.bf16.msrb.mxu2 %v1053_v63 }
 0x15c   :  { %480 = vmatpush.bf16.msrb.mxu0 %v1044_v1  ;;  %709 = vmatpush.bf16.msrb.mxu3 %v1061_v9 }
 0x15d   :  { %541 = vmatpush.bf16.msrb.mxu1 %v1036_v2 }
 0x15e   :  { %620 = vmatpush.bf16.msrb.mxu2 %v1052_v4 }
 0x160   :  { %481 = vmatpush.bf16.msrb.mxu0 %v1043_v6  ;;  %710 = vmatpush.bf16.msrb.mxu3 %v1060_v21 }
 0x161   :  { %542 = vmatpush.bf16.msrb.mxu1 %v1035_v7 }
 0x162   :  { %621 = vmatpush.bf16.msrb.mxu2 %v1051_v8 }
 0x164   :  { %482 = vmatpush.bf16.msrb.mxu0 %v1042_v10  ;;  %711 = vmatpush.bf16.msrb.mxu3 %v1059_v22 }
 0x165   :  { %543 = vmatpush.bf16.msrb.mxu1 %v1034_v11 }
 0x166   :  { %622 = vmatpush.bf16.msrb.mxu2 %v1050_v12 }
 0x168   :  { %483 = vmatpush.bf16.msrb.mxu0 %v1041_v14  ;;  %712 = vmatpush.bf16.msrb.mxu3 %v1058_v23 }
 0x169   :  { %544 = vmatpush.bf16.msrb.mxu1 %v1033_v15 }
 0x16a   :  { %623 = vmatpush.bf16.msrb.mxu2 %v1049_v17 }
 0x16b   :  { %484 = vmatmul.bf16.vlgmr.msrb.gmra.mxu0 %v410_v18 }
 0x16c   :  { %937 = vmatmul.msk.bf16.vlgmr.msrb.gmra.mxu1 %vm1315_vm3, %v936_v19  ;;  %713 = vmatpush.bf16.msrb.mxu3 %v1057_v24 }
 0x16d   :  { %972 = vmatmul.msk.bf16.vlgmr.msrb.gmra.mxu2 %vm1322_vm4, %v971_v20 }
 0x1e8   :  { %v485_v25 = vpop.f32.mrf.mxu0 }
 0x1e9   :  { %v546_v26 = vpop.f32.mrf.mxu1 }
 0x1ea   :  { %v547_v27 = vadd.f32 %v546_v26, %v485_v25 }
 0x1f0   :  { %v625_v29 = vpop.f32.mrf.mxu2  ;;  %v487_v31 = vpop.f32.mrf.mxu0 }
 0x1f1   :  { %v629_v30 = vadd.f32 %v625_v29, %v547_v27  ;;  %v548_v32 = vpop.f32.mrf.mxu1 }
 0x1f3   :  { %v635_v33 = vadd.f32 %v1075_v28, %v629_v30 }
 0x1f5   :  { %v636_v34 = vmax.f32 %v635_v33, 0.0 }
 0x1f7   :  { %v637_v35 = vpack.c.bf16 %v636_v34, %v636_v34 }
 0x1f8   :  { %v627_v36 = vpop.f32.mrf.mxu2 }
 0x1f9   :  { %714 = vmatmul.bf16.vlgmr.msrb.gmra.mxu3 %v637_v35 }
 0x27c   :  { %v715_v39 = vpop.f32.mrf.mxu3 }
 0x27d   :  { %v716_v40 = vadd.f32 %v1076_v38, %v715_v39 }
 0x27f   :  { %v722_v41 = vsel %vm721_vm5, %v716_v40, -1e+30 }
 0x280   :  { %723 = vmax.xlane.f32.xlu0 %v722_v41 }
 0x284   :  { %v717_v42 = vpop.f32.mrf.mxu3 }
 0x2f3   :  { %v724_v43 = vpop.xlane.xlu0 %723 }
 0x2f4   :  { %v725_v44 = vsub.f32 %v722_v41, %v724_v43 }
 0x2f6   :  { %v726_v45 = vmul.f32 1.442695, %v725_v44 }
 0x2f8   :  { %1077 = vpow2.f32 %v726_v45 }
 0x2fe   :  { %v1078_v46 = vpop.eup %1077 }
 0x2ff   :  { %728 = vadd.xlane.f32.xlu0 %v1078_v46 }
 0x372   :  { %v729_v47 = vpop.xlane.xlu0 %728 }
 0x373   :  { %1079 = vrcp.f32 %v729_v47 }
 0x379   :  { %v1080_v3 = vpop.eup %1079 }
 0x37a   :  { %v731_v48 = vmul.f32 %v1080_v3, %v1078_v46 }
 0x37c   :  { %732 = vst [vmem:[#allocation10] sm:$0xff] %v731_v48 }
 0x37d   :  { %743 = dma.vmem_to_hbm [thread:$0]  %s739_s9, 128, %s741_s6, [#allocation6]  }
 0x37e   :  { %1233 = dma.done.wait [#allocation6], 128  }
 0x37f   :  { %1234 = vsyncadd [#allocation6], 4294967168 }
 0x380   :  { %748 = vsyncpa [#allocation5], 1 }
 0x381   :  { %749 = vsyncpa [#allocation8], 1 }
 0x382   :  { %750 = vsyncpa [#allocation6], 1 }
 0x383   :  { %751 = vsyncmov [#allocation3] }
 0x386   :  { %s752_s12 = vpop.sfrf %751 }
 0x387   :  { %p1006_p0 = scmp.ne.s32.totalorder %s752_s12, 0 }
 0x389   :  { %756 = shalt.err (%p1006_p0)  }
 0x38a   :  { %758 = vsyncmov [#allocation3 + $0x1] }
 0x38d   :  { %s759_s13 = vpop.sfrf %758 }
 0x38e   :  { %p1007_p1 = scmp.ne.s32.totalorder %s759_s13, 0 }
 0x390   :  { %763 = shalt.err (%p1007_p1)  }

</bundles_post_ra>
